<compile_context>
chip_gen: v5e
topology: v5e:2x2
jax: 0.10.0
libtpu: 0.0.40
codegen_flags: <defaults>
</compile_context>

<pallas_src>
import functools

import jax
import jax.numpy as jnp
from jax import lax
from jax.experimental import pallas as pl
from jax.experimental.pallas import tpu as pltpu

_NEG = -1.0e30  # plain Python float: becomes a literal inside the kernel (no captured const)


def _round_up(v, m):
    return ((v + m - 1) // m) * m


def _single_buffered_spec(block_shape, index_map):
    """BlockSpec for blocks with a constant index_map (fetched once per grid):
    request single-buffering so the pipeline doesn't hold a useless second copy."""
    if hasattr(pl, "Buffered"):
        try:
            return pl.BlockSpec(block_shape, index_map, pipeline_mode=pl.Buffered(1))
        except TypeError:
            pass
    return pl.BlockSpec(block_shape, index_map)


def _router_kernel(x_ref, w_ref, b_ref, rw_ref, idx_ref, probs_ref, *, top_k):
    # logits = bf16(x) @ bf16(W_pad) + bias_pad  -> [bt, E_pad], f32 accumulation on MXU.
    # Casting x in-kernel (VPU) avoids an extra wrapper-side HBM cast pass.
    x = x_ref[...].astype(jnp.bfloat16)
    logits = jnp.dot(x, w_ref[...], preferred_element_type=jnp.float32) + b_ref[...]
    bt, e_pad = logits.shape

    # ---- full softmax over the (padded) expert axis ----
    # Pad columns carry a -1e30 bias (and zero weight columns) -> exp underflows to
    # exactly 0, so normalizing over E_pad equals normalizing over the real E.
    m = jnp.max(logits, axis=-1, keepdims=True)                # [bt, 1]
    e = jnp.exp(logits - m)                                    # [bt, E_pad]
    inv_denom = 1.0 / jnp.sum(e, axis=-1, keepdims=True)       # exact, cheap on [bt,1]
    probs_ref[...] = (e * inv_denom).astype(probs_ref.dtype)

    # ---- iterative top-k (k small & static -> Python unroll) ----
    expert_ids = lax.broadcasted_iota(jnp.int32, (bt, e_pad), 1)
    idx_lane = lax.broadcasted_iota(jnp.int32, idx_ref.shape, 1)     # [bt, idx_lanes]
    idx_out = jnp.zeros(idx_ref.shape, jnp.int32)
    topk_mask = jnp.zeros((bt, e_pad), jnp.bool_)
    masked = logits
    topk_denom = jnp.zeros((bt, 1), jnp.float32)  # sum_j exp(topk_logit_j - m)
    cur_max = m                                   # j=0 max == softmax max (reuse, 1 fewer XLU reduce)
    for j in range(top_k):
        if j > 0:
            cur_max = jnp.max(masked, axis=-1, keepdims=True)        # [bt, 1]
        is_max = masked == cur_max
        # first (lowest-index) occurrence of the max == lax.top_k / torch tie-break
        idx = jnp.min(jnp.where(is_max, expert_ids, e_pad),
                      axis=-1, keepdims=True)                        # [bt, 1]
        onehot = expert_ids == idx                                   # [bt, E_pad]
        topk_mask = jnp.logical_or(topk_mask, onehot)
        # lane-aligned write of the j-th index column into the padded index slab
        idx_out = jnp.where(idx_lane == j, idx, idx_out)
        # accumulate the top-k softmax denominator incrementally ([bt,1] EUP op)
        topk_denom = topk_denom + jnp.exp(cur_max - m)
        masked = jnp.where(onehot, _NEG, masked)

    # softmax(top-k logits) scattered back == selected exp(logits - m) / topk_denom
    # (no second full-width lane reduce, no second exp pass).
    routing = jnp.where(topk_mask, e, 0.0) * (1.0 / topk_denom)
    rw_ref[...] = routing.astype(rw_ref.dtype)
    idx_ref[...] = idx_out


def _router_forward(x, w_pad, bias_pad, *, num_experts, top_k, e_pad, block_batch):
    batch, input_size = x.shape
    idx_lanes = _round_up(max(top_k, 1), 128)  # lane-dense int32 index slab

    # Batch tiling: >= 2 grid steps whenever batch >= 32 so the "parallel" axis can
    # shard across both TensorCores on v7x; tiles are multiples of 16 rows.
    # bt=256 default: at bt=512 the ~6 live [bt, E_pad] f32 temporaries guarantee spill.
    if batch <= 16:
        bt = batch  # single full-dim tile (always layout-legal)
    else:
        bt = min(block_batch, _round_up(pl.cdiv(batch, 2), 16))
    b_pad = pl.cdiv(batch, bt) * bt
    x_in = jnp.pad(x, ((0, b_pad - batch), (0, 0))) if b_pad != batch else x
    grid = (b_pad // bt,)

    # VMEM budget: double-buffered x / output tiles, single-buffered W / bias.
    x_bytes = jnp.dtype(x.dtype).itemsize
    vmem_est = (2 * bt * input_size * x_bytes          # x tile (input dtype, 2 buffers)
                + input_size * e_pad * 2               # W (bf16, 1 buffer)
                + e_pad * 4                            # bias (f32, 1 buffer)
                + 2 * (2 * bt * e_pad * 4              # rw + probs tiles (f32, 2 buffers)
                       + bt * idx_lanes * 4))          # index tile (i32, 2 buffers)
    vmem_limit = min(max(32 << 20, vmem_est + (4 << 20)), 128 << 20)

    kernel = functools.partial(_router_kernel, top_k=top_k)
    out_shapes = (
        jax.ShapeDtypeStruct((b_pad, e_pad), jnp.float32),     # routing_weights (padded)
        jax.ShapeDtypeStruct((b_pad, idx_lanes), jnp.int32),   # top_k_indices (padded)
        jax.ShapeDtypeStruct((b_pad, e_pad), jnp.float32),     # all_probs (padded)
    )
    rw, idx, probs = pl.pallas_call(
        kernel,
        out_shape=out_shapes,
        grid_spec=pltpu.PrefetchScalarGridSpec(
            num_scalar_prefetch=0,
            grid=grid,
            in_specs=[
                pl.BlockSpec((bt, input_size), lambda i: (i, 0)),
                _single_buffered_spec((input_size, e_pad), lambda i: (0, 0)),
                _single_buffered_spec((1, e_pad), lambda i: (0, 0)),
            ],
            out_specs=[
                pl.BlockSpec((bt, e_pad), lambda i: (i, 0)),
                pl.BlockSpec((bt, idx_lanes), lambda i: (i, 0)),
                pl.BlockSpec((bt, e_pad), lambda i: (i, 0)),
            ],
        ),
        compiler_params=pltpu.CompilerParams(
            dimension_semantics=("parallel",),
            vmem_limit_bytes=int(vmem_limit)),
    )(x_in, w_pad, bias_pad)

    # Slice padding back off (batch rows + expert / index lanes).
    return (rw[:batch, :num_experts],
            idx[:batch, :top_k],
            probs[:batch, :num_experts])


def make_dynamic_moe_router(weight, bias, top_k, *, block_batch=256):
    """Factory: pads / casts the router params ONCE and returns `apply(x)`.

    weight: [input_size, num_experts], bias: [num_experts].
    """
    input_size, num_experts = weight.shape
    top_k = min(int(top_k), num_experts)

    # Lane-dense expert axis: pad to a multiple of 128; pad columns get zero weights
    # and a -1e30 bias so they contribute exactly 0 to softmax and are never top-k'd.
    e_pad = pl.cdiv(num_experts, 128) * 128
    w_pad = jnp.zeros((input_size, e_pad), jnp.bfloat16)
    w_pad = w_pad.at[:, :num_experts].set(weight.astype(jnp.bfloat16))
    bias_pad = jnp.full((1, e_pad), _NEG, jnp.float32)
    bias_pad = bias_pad.at[0, :num_experts].set(bias.astype(jnp.float32))

    def apply(x):
        return _router_forward(x, w_pad, bias_pad, num_experts=num_experts,
                               top_k=top_k, e_pad=e_pad, block_batch=block_batch)

    return apply


def dynamic_moe_router(x, weight, bias, top_k, *, block_batch=256):
    """Convenience one-shot wrapper (re-pads weights each call; prefer the factory)."""
    return make_dynamic_moe_router(weight, bias, top_k, block_batch=block_batch)(x)


if __name__ == "__main__":
    # Small shapes consistent with the module's forward: x is [batch, input_size].
    batch, input_size, num_experts, top_k = 8, 32, 8, 2

    key = jax.random.PRNGKey(0)
    kx, kw, kb = jax.random.split(key, 3)
    x = jax.random.normal(kx, (batch, input_size), dtype=jnp.float32)
    # Deterministic "nn.Linear(input_size, num_experts)" params, stored as [D, E].
    weight = jax.random.normal(kw, (input_size, num_experts), dtype=jnp.float32) * 0.1
    bias = jax.random.normal(kb, (num_experts,), dtype=jnp.float32) * 0.01

    router = make_dynamic_moe_router(weight, bias, top_k)
    routing_weights, top_k_indices, all_probs = router(x)
    jax.block_until_ready((routing_weights, top_k_indices, all_probs))

    # Pure-JAX reference of the same math (bf16 streaming, f32 accumulation).
    logits_ref = jnp.dot(x.astype(jnp.bfloat16), weight.astype(jnp.bfloat16),
                         preferred_element_type=jnp.float32) + bias
    probs_ref = jax.nn.softmax(logits_ref, axis=-1)
    topv_ref, topi_ref = lax.top_k(logits_ref, top_k)
    topp_ref = jax.nn.softmax(topv_ref, axis=-1)
    rw_ref = jnp.zeros_like(probs_ref).at[
        jnp.arange(batch)[:, None], topi_ref].set(topp_ref)

    assert all_probs.shape == (batch, num_experts)
    assert routing_weights.shape == (batch, num_experts)
    assert top_k_indices.shape == (batch, top_k)
    # Exact (non-approx) reciprocals -> tight tolerances.
    assert jnp.allclose(all_probs, probs_ref, atol=1e-4)
    assert jnp.allclose(routing_weights, rw_ref, atol=1e-4)
    assert jnp.array_equal(top_k_indices, topi_ref.astype(jnp.int32))
    assert jnp.allclose(jnp.sum(routing_weights, axis=-1),
                        jnp.ones((batch,)), atol=1e-4)

    print("KERNEL_OK")
</pallas_src>

<mosaic_0001>
module attributes {stable_mosaic.version = 11 : i64} {
  func.func @_router_kernel(%arg0: i32, %arg1: memref<8x32xf32, #tpu.memory_space<vmem>>, %arg2: memref<32x128xbf16, #tpu.memory_space<vmem>>, %arg3: memref<1x128xf32, #tpu.memory_space<vmem>>, %arg4: memref<8x128xf32, #tpu.memory_space<vmem>>, %arg5: memref<8x128xi32, #tpu.memory_space<vmem>>, %arg6: memref<8x128xf32, #tpu.memory_space<vmem>>) attributes {dimension_semantics = [#tpu.dimension_semantics<parallel>], iteration_bounds = array<i64: 1>, scalar_prefetch = 0 : i64, scratch_operands = 0 : i64, tpu.core_type = #tpu.core_type<tc>, window_params = [{transform_indices = @transform_0, window_bounds = array<i64: 8, 32>}, {pipeline_mode = #tpu.pipeline_mode<synchronous>, transform_indices = @transform_1, window_bounds = array<i64: 32, 128>}, {pipeline_mode = #tpu.pipeline_mode<synchronous>, transform_indices = @transform_2, window_bounds = array<i64: 1, 128>}, {transform_indices = @transform_3, window_bounds = array<i64: 8, 128>}, {transform_indices = @transform_4, window_bounds = array<i64: 8, 128>}, {transform_indices = @transform_5, window_bounds = array<i64: 8, 128>}]} {
    %c0 = arith.constant 0 : index
    %c0_0 = arith.constant 0 : index
    %0 = vector.load %arg1[%c0, %c0_0] : memref<8x32xf32, #tpu.memory_space<vmem>>, vector<8x32xf32>
    %1 = arith.truncf %0 : vector<8x32xf32> to vector<8x32xbf16>
    %c0_1 = arith.constant 0 : index
    %c0_2 = arith.constant 0 : index
    %2 = vector.load %arg2[%c0_1, %c0_2] : memref<32x128xbf16, #tpu.memory_space<vmem>>, vector<32x128xbf16>
    %cst = arith.constant dense<0.000000e+00> : vector<8x128xf32>
    %3 = tpu.matmul %1, %2, %cst {dimension_numbers = #tpu.dot_dimension_numbers<[1], [0], [0], [1], [0, 0, 1, 1], [], []>} : vector<8x32xbf16>, vector<32x128xbf16>, vector<8x128xf32> -> vector<8x128xf32>
    %c0_3 = arith.constant 0 : index
    %c0_4 = arith.constant 0 : index
    %4 = vector.load %arg3[%c0_3, %c0_4] : memref<1x128xf32, #tpu.memory_space<vmem>>, vector<1x128xf32>
    %5 = vector.broadcast %4 : vector<1x128xf32> to vector<8x128xf32>
    %6 = arith.addf %3, %5 : vector<8x128xf32>
    %cst_5 = arith.constant dense<0xFF800000> : vector<8xf32>
    %7 = vector.multi_reduction <maximumf>, %6, %cst_5 [1] : vector<8x128xf32> to vector<8xf32>
    %8 = vector.shape_cast %7 : vector<8xf32> to vector<8x1xf32>
    %9 = vector.broadcast %8 : vector<8x1xf32> to vector<8x128xf32>
    %10 = arith.subf %6, %9 : vector<8x128xf32>
    %11 = math.exp %10 : vector<8x128xf32>
    %cst_6 = arith.constant dense<0.000000e+00> : vector<8xf32>
    %12 = vector.multi_reduction <add>, %11, %cst_6 [1] : vector<8x128xf32> to vector<8xf32>
    %13 = vector.shape_cast %12 : vector<8xf32> to vector<8x1xf32>
    %cst_7 = arith.constant 1.000000e+00 : f32
    %14 = vector.broadcast %cst_7 : f32 to vector<8x1xf32>
    %15 = arith.divf %14, %13 : vector<8x1xf32>
    %16 = vector.broadcast %15 : vector<8x1xf32> to vector<8x128xf32>
    %17 = arith.mulf %11, %16 : vector<8x128xf32>
    %c0_8 = arith.constant 0 : index
    %c0_9 = arith.constant 0 : index
    %18 = vector.load %arg6[%c0_8, %c0_9] : memref<8x128xf32, #tpu.memory_space<vmem>>, vector<8x128xf32>
    tpu.vector_store %arg6[%c0_8, %c0_9], %17 {strides = array<i32>} : memref<8x128xf32, #tpu.memory_space<vmem>>, vector<8x128xf32>,
    %19 = tpu.iota {dimensions = array<i32: 1>} : vector<8x128xi32>
    %20 = tpu.iota {dimensions = array<i32: 1>} : vector<8x128xi32>
    %c0_i32 = arith.constant 0 : i32
    %21 = vector.broadcast %c0_i32 : i32 to vector<8x128xi32>
    %false = arith.constant false
    %22 = vector.broadcast %false : i1 to vector<8x128xi1>
    %cst_10 = arith.constant 0.000000e+00 : f32
    %23 = vector.broadcast %cst_10 : f32 to vector<8x1xf32>
    %24 = vector.broadcast %8 : vector<8x1xf32> to vector<8x128xf32>
    %25 = arith.cmpf oeq, %6, %24 : vector<8x128xf32>
    %c128_i32 = arith.constant 128 : i32
    %26 = vector.broadcast %c128_i32 : i32 to vector<8x128xi32>
    %27 = arith.select %25, %19, %26 : vector<8x128xi1>, vector<8x128xi32>
    %cst_11 = arith.constant dense<2147483647> : vector<8xi32>
    %28 = vector.multi_reduction <minsi>, %27, %cst_11 [1] : vector<8x128xi32> to vector<8xi32>
    %29 = vector.shape_cast %28 : vector<8xi32> to vector<8x1xi32>
    %30 = vector.broadcast %29 : vector<8x1xi32> to vector<8x128xi32>
    %31 = arith.cmpi eq, %19, %30 : vector<8x128xi32>
    %32 = arith.ori %22, %31 : vector<8x128xi1>
    %c0_i32_12 = arith.constant 0 : i32
    %33 = vector.broadcast %c0_i32_12 : i32 to vector<8x128xi32>
    %34 = arith.cmpi eq, %20, %33 : vector<8x128xi32>
    %35 = vector.shape_cast %29 : vector<8x1xi32> to vector<8x1xi32>
    %36 = vector.broadcast %35 : vector<8x1xi32> to vector<8x128xi32>
    %37 = arith.select %34, %36, %21 : vector<8x128xi1>, vector<8x128xi32>
    %38 = arith.subf %8, %8 : vector<8x1xf32>
    %39 = math.exp %38 : vector<8x1xf32>
    %40 = arith.addf %23, %39 : vector<8x1xf32>
    %cst_13 = arith.constant -1.000000e+30 : f32
    %41 = vector.broadcast %cst_13 : f32 to vector<8x128xf32>
    %42 = arith.select %31, %41, %6 : vector<8x128xi1>, vector<8x128xf32>
    %cst_14 = arith.constant dense<0xFF800000> : vector<8xf32>
    %43 = vector.multi_reduction <maximumf>, %42, %cst_14 [1] : vector<8x128xf32> to vector<8xf32>
    %44 = vector.shape_cast %43 : vector<8xf32> to vector<8x1xf32>
    %45 = vector.broadcast %44 : vector<8x1xf32> to vector<8x128xf32>
    %46 = arith.cmpf oeq, %42, %45 : vector<8x128xf32>
    %c128_i32_15 = arith.constant 128 : i32
    %47 = vector.broadcast %c128_i32_15 : i32 to vector<8x128xi32>
    %48 = arith.select %46, %19, %47 : vector<8x128xi1>, vector<8x128xi32>
    %cst_16 = arith.constant dense<2147483647> : vector<8xi32>
    %49 = vector.multi_reduction <minsi>, %48, %cst_16 [1] : vector<8x128xi32> to vector<8xi32>
    %50 = vector.shape_cast %49 : vector<8xi32> to vector<8x1xi32>
    %51 = vector.broadcast %50 : vector<8x1xi32> to vector<8x128xi32>
    %52 = arith.cmpi eq, %19, %51 : vector<8x128xi32>
    %53 = arith.ori %32, %52 : vector<8x128xi1>
    %c1_i32 = arith.constant 1 : i32
    %54 = vector.broadcast %c1_i32 : i32 to vector<8x128xi32>
    %55 = arith.cmpi eq, %20, %54 : vector<8x128xi32>
    %56 = vector.shape_cast %50 : vector<8x1xi32> to vector<8x1xi32>
    %57 = vector.broadcast %56 : vector<8x1xi32> to vector<8x128xi32>
    %58 = arith.select %55, %57, %37 : vector<8x128xi1>, vector<8x128xi32>
    %59 = arith.subf %44, %8 : vector<8x1xf32>
    %60 = math.exp %59 : vector<8x1xf32>
    %61 = arith.addf %40, %60 : vector<8x1xf32>
    %cst_17 = arith.constant 0.000000e+00 : f32
    %62 = vector.broadcast %cst_17 : f32 to vector<8x128xf32>
    %63 = arith.select %53, %11, %62 : vector<8x128xi1>, vector<8x128xf32>
    %cst_18 = arith.constant 1.000000e+00 : f32
    %64 = vector.broadcast %cst_18 : f32 to vector<8x1xf32>
    %65 = arith.divf %64, %61 : vector<8x1xf32>
    %66 = vector.broadcast %65 : vector<8x1xf32> to vector<8x128xf32>
    %67 = arith.mulf %63, %66 : vector<8x128xf32>
    %c0_19 = arith.constant 0 : index
    %c0_20 = arith.constant 0 : index
    %68 = vector.load %arg4[%c0_19, %c0_20] : memref<8x128xf32, #tpu.memory_space<vmem>>, vector<8x128xf32>
    tpu.vector_store %arg4[%c0_19, %c0_20], %67 {strides = array<i32>} : memref<8x128xf32, #tpu.memory_space<vmem>>, vector<8x128xf32>,
    %c0_21 = arith.constant 0 : index
    %c0_22 = arith.constant 0 : index
    %69 = vector.load %arg5[%c0_21, %c0_22] : memref<8x128xi32, #tpu.memory_space<vmem>>, vector<8x128xi32>
    tpu.vector_store %arg5[%c0_21, %c0_22], %58 {strides = array<i32>} : memref<8x128xi32, #tpu.memory_space<vmem>>, vector<8x128xi32>,
    return
  }
  func.func @transform_0(%arg0: i32) -> (i32, i32) {
    %c0_i32 = arith.constant 0 : i32
    %c0_i32_0 = arith.constant 0 : i32
    return %arg0, %c0_i32 : i32, i32
  }
  func.func @transform_1(%arg0: i32) -> (i32, i32) {
    %c0_i32 = arith.constant 0 : i32
    %c0_i32_0 = arith.constant 0 : i32
    %c0_i32_1 = arith.constant 0 : i32
    return %c0_i32, %c0_i32_0 : i32, i32
  }
  func.func @transform_2(%arg0: i32) -> (i32, i32) {
    %c0_i32 = arith.constant 0 : i32
    %c0_i32_0 = arith.constant 0 : i32
    %c0_i32_1 = arith.constant 0 : i32
    return %c0_i32, %c0_i32_0 : i32, i32
  }
  func.func @transform_3(%arg0: i32) -> (i32, i32) {
    %c0_i32 = arith.constant 0 : i32
    %c0_i32_0 = arith.constant 0 : i32
    return %arg0, %c0_i32 : i32, i32
  }
  func.func @transform_4(%arg0: i32) -> (i32, i32) {
    %c0_i32 = arith.constant 0 : i32
    %c0_i32_0 = arith.constant 0 : i32
    return %arg0, %c0_i32 : i32, i32
  }
  func.func @transform_5(%arg0: i32) -> (i32, i32) {
    %c0_i32 = arith.constant 0 : i32
    %c0_i32_0 = arith.constant 0 : i32
    return %arg0, %c0_i32 : i32, i32
  }
}

</mosaic_0001>

<bundles_post_ra>
// kernel: tpu_custom_call.1
= control target key start
LH: loop header
LB: loop body
LE: loop exit
PB: predicated region body
PF: predicated region fallthrough
CT: control target
= control target key end

     0   :  { %11 = vsyncpa [#allocation3], 0  ;;  %s482_s0 = inlined_call_operand.hbm [shape: f32[8,32], index: 0, kind: input, shape index: {}]   ;;  %s483_s1 = inlined_call_operand.hbm [shape: bf16[32,128], index: 1, kind: input, shape index: {}]   ;;  %s484_s2 = inlined_call_operand.vmem [shape: f32[1,128], index: 2, kind: input, shape index: {}]   ;;  %s485_s3 = inlined_call_operand.hbm [shape: f32[8,128], index: 3, kind: output, shape index: {0}]   ;;  %s486_s4 = inlined_call_operand.hbm [shape: s32[8,128], index: 4, kind: output, shape index: {1}]   ;;  %s487_s5 = inlined_call_operand.hbm [shape: f32[8,128], index: 5, kind: output, shape index: {2}]  }
   0x1   :  { %12 = vsyncpa [#allocation6], 0 }
   0x2   :  { %13 = vsyncpa [#allocation4], 0 }
   0x3   :  { %14 = vsyncpa [#allocation9], 0  ;;  %s20_s20 = sshll.u32 %s482_s0, 4  ;;  %s390_s21 = smov [#allocation2]   ;;  %s21_s20 = int_to_ptr.hbm [resolvable:$true] %s20_s20 }
   0x4   :  { %s22_s22 = sshll.u32 %s390_s21, 4  ;;  %s30_s25 = sshll.u32 %s483_s1, 4  ;;  %s23_s22 = int_to_ptr.vmem [resolvable:$true] %s22_s22  ;;  %s31_s25 = int_to_ptr.hbm [resolvable:$true] %s30_s25 }
   0x5   :  { %25 = dma.hbm_to_vmem [thread:$0]  %s21_s20, 128, %s23_s22, [#allocation3]  }
   0x6   :  { %s391_s26 = smov [#allocation5]   ;;  %s392_s28 = smov 64  }
   0x7   :  { %s32_s27 = sshll.u32 %s391_s26, 4  ;;  %s393_s29 = smov 4   ;;  %s33_s27 = int_to_ptr.vmem [resolvable:$true] %s32_s27 }
   0x8   :  { %38 = dma.hbm_to_vmem [thread:$0]  %s31_s25, 256, %s33_s27, [#allocation6], %s392_s28, %s392_s28, %s393_s29  }
   0x9   :  { %382 = dma.done.wait [#allocation3], 128  }
   0xa   :  { %383 = vsyncadd [#allocation3], 4294967168 }
   0xb   :  { %384 = dma.done.wait [#allocation6], 256  }
   0xc   :  { %385 = vsyncadd [#allocation6], 4294967040  ;;  %v243_v0 = vld [vmem:[#allocation5 + $0x8] sm:$0xff]  ;;  %v242_v1 = vld [vmem:[#allocation5] sm:$0xff]  ;;  %vm72_vm0 = vcmask 261120   ;;  %v113_v8 = vlaneseq  ;;  %s202_s8 = sshll.u32 %s486_s4, 4  ;;  %s203_s8 = int_to_ptr.hbm [resolvable:$true] %s202_s8 }
   0xd   :  { %82 = vmatpush.bf16.msra.mxu0 %v243_v0  ;;  %v50_v2 = vld [vmem:[#allocation2] sm:$0xff]  ;;  %s395_s9 = smov [#allocation10]   ;;  %s213_s13 = sshll.u32 %s487_s5, 4  ;;  %s214_s13 = int_to_ptr.hbm [resolvable:$true] %s213_s13 }
   0xe   :  { %v51_v3 = vpack.c.bf16 %v50_v2, %v50_v2  ;;  %v251_v4 = vld [vmem:[%s484_s2] ss:$0 sm:$0xff]  ;;  %v436_v9 = vand.u32 127, %v113_v8  ;;  %s394_s2 = smov [#allocation8]   ;;  %s211_s10 = sshll.u32 %s395_s9, 4  ;;  %s212_s10 = int_to_ptr.vmem [resolvable:$true] %s211_s10 }
   0xf   :  { %s452_s30 = sshll.u32 %s394_s2, 4  ;;  %s396_s14 = smov [#allocation7]   ;;  %s201_s30 = int_to_ptr.vmem [resolvable:$true] %s452_s30 }
  0x10   :  { %vm132_vm11 = vcmp.eq.s32.totalorder %v436_v9, 0  ;;  %vm159_vm12 = vcmp.eq.s32.totalorder %v436_v9, 1  ;;  %s189_s15 = sshll.u32 %s396_s14, 4  ;;  %s191_s17 = sshll.u32 %s485_s3, 4  ;;  %s190_s15 = int_to_ptr.vmem [resolvable:$true] %s189_s15  ;;  %s192_s17 = int_to_ptr.hbm [resolvable:$true] %s191_s17 }
  0x11   :  { %83 = vmatpush.bf16.msra.mxu0 %v242_v1 }
  0x14   :  { %241 = vmatmul.msk.bf16.vlgmr.msra.gmra.mxu0 %vm72_vm0, %v51_v3 }
  0x91   :  { %v85_v5 = vpop.f32.mrf.mxu0 }
  0x92   :  { %v86_v6 = vadd.f32 %v251_v4, %v85_v5 }
  0x94   :  { %89 = vmax.xlane.f32.xlu0 %v86_v6 }
  0x99   :  { %v87_v7 = vpop.f32.mrf.mxu0 }
 0x107   :  { %v90_v10 = vpop.xlane.xlu0 %89 }
 0x108   :  { %vm115_vm1 = vcmp.eq.f32.partialorder %v86_v6, %v90_v10  ;;  %v91_v24 = vsub.f32 %v86_v6, %v90_v10  ;;  %v134_v48 = vsub.f32 %v90_v10, %v90_v10 }
 0x109   :  { %v116_v11 = vsel %vm115_vm1, %v436_v9, 128 }
 0x10a   :  { %v118_v12 = vshra.s32 %v116_v11, 16  ;;  %v117_v14 = vand.u32 65535, %v116_v11  ;;  %v92_v28 = vmul.f32 1.442695, %v91_v24  ;;  %v135_v50 = vmul.f32 1.442695, %v134_v48 }
 0x10c   :  { %v120_v13 = vcvt.s32.f32 %v118_v12  ;;  %v119_v16 = vcvt.s32.f32 %v117_v14  ;;  %252 = vpow2.f32 %v92_v28 }
 0x10e   :  { %121 = vmin.xlane.f32.xlu0 %v120_v13 }
 0x112   :  { %v447_v30 = vpop.eup %252 }
 0x181   :  { %v122_v15 = vpop.xlane.xlu0 %121 }
 0x182   :  { %vm123_vm2 = vcmp.eq.f32.partialorder %v120_v13, %v122_v15  ;;  %v128_v18 = vcvt.f32.s32 %v122_v15 }
 0x183   :  { %v124_v17 = vsel %vm123_vm2, %v119_v16, inf }
 0x184   :  { %125 = vmin.xlane.f32.xlu1 %v124_v17  ;;  %v129_v20 = vshll.u32 %v128_v18, 16 }
 0x1f7   :  { %v126_v19 = vpop.xlane.xlu1 %125 }
 0x1f8   :  { %v127_v21 = vcvt.f32.s32 %v126_v19 }
 0x1fa   :  { %v439_v22 = vadd.s32 %v129_v20, %v127_v21 }
 0x1fc   :  { %vm131_vm3 = vcmp.eq.s32.totalorder %v436_v9, %v439_v22  ;;  %v133_v3 = vsel %vm132_vm11, %v439_v22, 0 }
 0x1fd   :  { %v138_v23 = vsel %vm131_vm3, -1e+30, %v86_v6 }
 0x1fe   :  { %139 = vmax.xlane.f32.xlu1 %v138_v23 }
 0x271   :  { %v140_v25 = vpop.xlane.xlu1 %139 }
 0x272   :  { %vm141_vm4 = vcmp.eq.f32.partialorder %v138_v23, %v140_v25  ;;  %v161_v47 = vsub.f32 %v140_v25, %v90_v10 }
 0x273   :  { %v142_v26 = vsel %vm141_vm4, %v436_v9, 128 }
 0x274   :  { %v144_v27 = vshra.s32 %v142_v26, 16  ;;  %v143_v31 = vand.u32 65535, %v142_v26  ;;  %v162_v49 = vmul.f32 1.442695, %v161_v47 }
 0x276   :  { %v146_v29 = vcvt.s32.f32 %v144_v27  ;;  %v145_v33 = vcvt.s32.f32 %v143_v31 }
 0x278   :  { %147 = vmin.xlane.f32.xlu2 %v146_v29 }
 0x280   :  { %94 = vadd.xlane.f32.xlu2 %v447_v30 }
 0x2eb   :  { %v148_v32 = vpop.xlane.xlu2 %147 }
 0x2ec   :  { %vm149_vm5 = vcmp.eq.f32.partialorder %v146_v29, %v148_v32  ;;  %v154_v58 = vcvt.f32.s32 %v148_v32 }
 0x2ed   :  { %v150_v34 = vsel %vm149_vm5, %v145_v33, inf }
 0x2ee   :  { %151 = vmin.xlane.f32.xlu0 %v150_v34  ;;  %v155_v61 = vshll.u32 %v154_v58, 16 }
 0x2f3   :  { %v95_v35 = vpop.xlane.xlu2 %94 }
 0x2f4   :  { %254 = vrcp.f32 %v95_v35  ;;  %v107_v39 = vand.u32 2147483648, %v95_v35  ;;  %v105_v41 = vand.u32 2147483647, %v95_v35  ;;  %vm101_vm7 = vweird.f32 %v95_v35 }
 0x2f5   :  { %256 = vpow2.f32 %v162_v49 }
 0x2f6   :  { %v108_v43 = vor.u32 1.1754944e-38, %v107_v39  ;;  %vm106_vm9 = vcmp.eq.f32.partialorder %v105_v41, 8.507059e+37  ;;  %258 = vpow2.f32 %v135_v50 }
 0x2fa   :  { %v255_v36 = vpop.eup %254 }
 0x2fb   :  { %v97_v37 = vmul.f32 %v255_v36, %v95_v35  ;;  %vm102_vm6 = vweird.f32 %v255_v36  ;;  %v257_v51 = vpop.eup %256 }
 0x2fc   :  { %vm103_vm8 = vmor %vm101_vm7, %vm102_vm6  ;;  %v259_v52 = vpop.eup %258 }
 0x2fd   :  { %v98_v38 = vsub.f32 1.0, %v97_v37  ;;  %v164_v53 = vadd.f32 %v259_v52, %v257_v51 }
 0x2ff   :  { %v99_v40 = vmul.f32 %v255_v36, %v98_v38  ;;  %260 = vrcp.f32 %v164_v53  ;;  %v177_v63 = vand.u32 2147483648, %v164_v53  ;;  %vm171_vm13 = vweird.f32 %v164_v53 }
 0x300   :  { %v175_v0 = vand.u32 2147483647, %v164_v53 }
 0x301   :  { %v100_v42 = vadd.f32 %v255_v36, %v99_v40  ;;  %v178_v6 = vor.u32 1.1754944e-38, %v177_v63 }
 0x302   :  { %vm176_vm1 = vcmp.eq.f32.partialorder %v175_v0, 8.507059e+37 }
 0x303   :  { %v104_v44 = vsel %vm103_vm8, %v255_v36, %v100_v42 }
 0x304   :  { %v109_v45 = vsel %vm106_vm9, %v108_v43, %v104_v44 }
 0x305   :  { %v111_v46 = vmul.f32 %v447_v30, %v109_v45  ;;  %v261_v54 = vpop.eup %260 }
 0x306   :  { %v167_v55 = vmul.f32 %v261_v54, %v164_v53  ;;  %vm172_vm10 = vweird.f32 %v261_v54 }
 0x307   :  { %112 = vst [vmem:[#allocation10] sm:$0xff] %v111_v46  ;;  %vm462_vm14 = vmor %vm171_vm13, %vm172_vm10 }
 0x308   :  { %v168_v56 = vsub.f32 1.0, %v167_v55 }
 0x30a   :  { %v169_v57 = vmul.f32 %v261_v54, %v168_v56 }
 0x30c   :  { %v170_v60 = vadd.f32 %v261_v54, %v169_v57 }
 0x30e   :  { %v174_v4 = vsel %vm462_vm14, %v261_v54, %v170_v60 }
 0x30f   :  { %v179_v8 = vsel %vm176_vm1, %v178_v6, %v174_v4 }
 0x361   :  { %v152_v59 = vpop.xlane.xlu0 %151 }
 0x362   :  { %v153_v62 = vcvt.f32.s32 %v152_v59 }
 0x364   :  { %v156_v1 = vadd.s32 %v155_v61, %v153_v62 }
 0x366   :  { %vm157_vm15 = vcmp.eq.s32.totalorder %v436_v9, %v156_v1  ;;  %v160_v5 = vsel %vm159_vm12, %v156_v1, %v133_v3 }
 0x367   :  { %vm158_vm0 = vmor %vm131_vm3, %vm157_vm15  ;;  %183 = vst [vmem:[#allocation8] sm:$0xff] %v160_v5 }
 0x368   :  { %v165_v7 = vsel %vm158_vm0, %v447_v30, 0.0  ;;  %205 = dma.vmem_to_hbm [thread:$0]  %s201_s30, 128, %s203_s8, [#allocation9]  }
 0x369   :  { %v181_v10 = vmul.f32 %v179_v8, %v165_v7  ;;  %216 = dma.vmem_to_hbm [thread:$0]  %s212_s10, 128, %s214_s13, [#allocation9]  }
 0x36b   :  { %182 = vst [vmem:[#allocation7] sm:$0xff] %v181_v10 }
 0x36c   :  { %194 = dma.vmem_to_hbm [thread:$0]  %s190_s15, 128, %s192_s17, [#allocation4]  }
 0x36d   :  { %386 = dma.done.wait [#allocation4], 128  }
 0x36e   :  { %387 = vsyncadd [#allocation4], 4294967168 }
 0x36f   :  { %388 = dma.done.wait [#allocation9], 256  }
 0x370   :  { %389 = vsyncadd [#allocation9], 4294967040 }
 0x371   :  { %229 = vsyncpa [#allocation3], 1 }
 0x372   :  { %230 = vsyncpa [#allocation6], 1 }
 0x373   :  { %231 = vsyncpa [#allocation4], 1 }
 0x374   :  { %232 = vsyncpa [#allocation9], 1 }

</bundles_post_ra>
